<compile_context>
chip_gen: v7x
topology: tpu7x:2x2x1
jax: 0.10.0
libtpu: 0.0.40
codegen_flags: <defaults>
</compile_context>

<pallas_src>
import functools

import jax
import jax.numpy as jnp
import numpy as np
from jax.experimental import pallas as pl
from jax.experimental.pallas import tpu as pltpu


# ---------------------------------------------------------------------------
# Phase 1: per row tile, ratio[i] = -log(s_j[i] / s_i[i]) = log(s_i) - log(s_j)
# ---------------------------------------------------------------------------
def _ratio_kernel(xr_ref, xc_ref, lr_ref, lc_ref, ratio_ref, *, tau, use_identity_mask):
    xr = xr_ref[...]                                    # (TM, D) gram dtype
    xc = xc_ref[...]                                    # (L,  D) gram dtype
    inv_tau = 1.0 / tau

    # Gram tile M = (Xr @ Xc^T) / tau; transpose folded into the contraction.
    m = jax.lax.dot_general(
        xr, xc, (((1,), (1,)), ((), ())),
        preferred_element_type=jnp.float32) * inv_tau   # (TM, L)

    row_max = jnp.max(m, axis=1, keepdims=True)         # (TM, 1)
    s = jnp.exp(m - row_max)                            # (TM, L)

    eq = (lr_ref[...] == lc_ref[...]).astype(jnp.float32)   # (TM, L)

    sum_s = jnp.sum(s, axis=1, keepdims=True)           # (TM, 1)
    sum_s_eq = jnp.sum(s * eq, axis=1, keepdims=True)   # (TM, 1)

    if use_identity_mask:
        # diag(X X^T)[i] = ||x_i||^2 -> cheap O(TM*D) recompute instead of an (L,L) mask.
        xr32 = xr.astype(jnp.float32)
        diag = jnp.sum(xr32 * xr32, axis=1, keepdims=True) * inv_tau
        s_diag = jnp.exp(diag - row_max)
        s_i = sum_s - s_diag
        s_j = sum_s_eq - s_diag
    else:
        s_i = sum_s
        s_j = sum_s_eq

    s_i = jnp.maximum(s_i, 1e-10)
    s_j = jnp.maximum(s_j, 1e-10)
    ratio_ref[...] = jnp.log(s_i) - jnp.log(s_j)        # == -log(s_j / s_i)


# ---------------------------------------------------------------------------
# Phase 2: per row tile,
#   log_p[i] = (sum_j mask_j[i,j] * ratio[j]) / pos_num[i]
#            = (eq @ ratio - [identity]*ratio[i]) / (sum_j eq[i,j] - [identity])
# ---------------------------------------------------------------------------
def _logp_kernel(lr_ref, lc_ref, ratio_all_ref, ratio_tile_ref, logp_ref, *, use_identity_mask):
    eq = (lr_ref[...] == lc_ref[...]).astype(jnp.float32)          # (TM, L)
    num = jnp.dot(eq, ratio_all_ref[...],
                  preferred_element_type=jnp.float32)              # (TM, 1) MXU mat-vec
    pos = jnp.sum(eq, axis=1, keepdims=True)                       # (TM, 1)
    if use_identity_mask:
        num = num - ratio_tile_ref[...]
        pos = pos - 1.0
    logp_ref[...] = num / pos


def _pick_row_tile(L):
    if L % 8 != 0:
        return L                 # single full block (block == full dim is always legal)
    for t in (512, 256, 128, 64, 32, 16, 8):
        if t <= L and L % t == 0:
            return t
    return L


def _vmem_limit(block_bytes, temp_bytes):
    # Double-buffered pipelined blocks + in-kernel temporaries + headroom,
    # clamped to the v7x per-core physical VMEM (64 MiB).
    need = 2 * block_bytes + temp_bytes + (4 << 20)
    return int(min(max(need, 32 << 20), 64 << 20))


def contrastive_loss(batch_label, *x, mixup, l=None, tau=5.0,
                     gram_dtype=jnp.float32, row_tile=None):
    """JAX/Pallas equivalent of Contrastive_Loss.forward (`l` is unused, as in torch).

    gram_dtype: dtype of the X @ X^T Gram matmul operands (accumulation is always
    f32). Pass jnp.bfloat16 on v6e/v7x for the native MXU path.
    """
    n_views = len(x)
    use_identity_mask = (n_views != 1)

    # TODO(synk): feed the views/mixup through per-view BlockSpec row offsets to
    # avoid materializing this concatenated HBM copy (perf-review item 10).
    X = jnp.concatenate([jnp.asarray(v, jnp.float32) for v in x]
                        + [jnp.asarray(mixup, jnp.float32)], axis=0)        # (L, D)
    labels = jnp.concatenate([jnp.asarray(batch_label)] * (n_views + 1), axis=0)

    L, D = X.shape
    lab_dtype = jnp.float32 if jnp.issubdtype(labels.dtype, jnp.floating) else jnp.int32
    labels = labels.astype(lab_dtype)
    lab_col = labels.reshape(L, 1)
    lab_row = labels.reshape(1, L)

    Xg = X.astype(gram_dtype)

    TM = row_tile if row_tile is not None else _pick_row_tile(L)
    assert L % TM == 0
    num_tiles = L // TM
    grid = (num_tiles,)

    gs = jnp.dtype(gram_dtype).itemsize
    ls = jnp.dtype(lab_dtype).itemsize

    # ---- phase 1: ratio[i] per row ----
    ratio = pl.pallas_call(
        functools.partial(_ratio_kernel, tau=float(tau),
                          use_identity_mask=use_identity_mask),
        out_shape=jax.ShapeDtypeStruct((L, 1), jnp.float32),
        grid=grid,
        in_specs=[
            pl.BlockSpec((TM, D), lambda i: (i, 0)),    # X rows of this tile
            pl.BlockSpec((L, D), lambda i: (0, 0)),     # all of X (column side)
            pl.BlockSpec((TM, 1), lambda i: (i, 0)),    # labels (rows)
            pl.BlockSpec((1, L), lambda i: (0, 0)),     # labels (columns)
        ],
        out_specs=pl.BlockSpec((TM, 1), lambda i: (i, 0)),
        compiler_params=pltpu.CompilerParams(
            dimension_semantics=("parallel",),          # row tiles -> both v7x TCs
            vmem_limit_bytes=_vmem_limit(
                block_bytes=(TM * D + L * D) * gs + (TM + L) * ls + TM * 4,
                temp_bytes=5 * TM * L * 4),
        ),
    )(Xg, Xg, lab_col, lab_row)

    # ---- phase 2: log_p[i] per row ----
    log_p = pl.pallas_call(
        functools.partial(_logp_kernel, use_identity_mask=use_identity_mask),
        out_shape=jax.ShapeDtypeStruct((L, 1), jnp.float32),
        grid=grid,
        in_specs=[
            pl.BlockSpec((TM, 1), lambda i: (i, 0)),    # labels (rows)
            pl.BlockSpec((1, L), lambda i: (0, 0)),     # labels (columns)
            pl.BlockSpec((L, 1), lambda i: (0, 0)),     # ratio, all rows
            pl.BlockSpec((TM, 1), lambda i: (i, 0)),    # ratio, this tile's rows
        ],
        out_specs=pl.BlockSpec((TM, 1), lambda i: (i, 0)),
        compiler_params=pltpu.CompilerParams(
            dimension_semantics=("parallel",),
            vmem_limit_bytes=_vmem_limit(
                block_bytes=(TM + L) * ls + (L + 2 * TM) * 4,
                temp_bytes=4 * TM * L * 4),
        ),
    )(lab_col, lab_row, ratio, ratio)

    return jnp.mean(log_p)


def _reference_loss(batch_label, *x, mixup, tau=5.0):
    """Pure-JAX reference mirroring the torch forward (for verification)."""
    X = jnp.concatenate([jnp.asarray(v, jnp.float32) for v in x]
                        + [jnp.asarray(mixup, jnp.float32)], axis=0)
    labels = jnp.concatenate([jnp.asarray(batch_label)] * (len(x) + 1), axis=0)
    L = X.shape[0]
    M = jnp.matmul(X, X.T, precision=jax.lax.Precision.HIGHEST) / tau
    s = jnp.exp(M - jnp.max(M, axis=1, keepdims=True))
    if len(x) == 1:
        mask_i = jnp.ones((L, L), jnp.float32)
    else:
        mask_i = 1.0 - jnp.eye(L, dtype=jnp.float32)
    labf = labels.astype(jnp.float32)
    mask_j = ((labf[:, None] - labf[None, :]) == 0).astype(jnp.float32) * mask_i
    pos_num = jnp.sum(mask_j, axis=1)
    s_i = jnp.maximum(jnp.sum(s * mask_i, axis=1), 1e-10)
    s_j = jnp.maximum(jnp.sum(s * mask_j, axis=1), 1e-10)
    log_p = jnp.sum(-jnp.log(s_j / s_i)[None, :] * mask_j, axis=1) / pos_num
    return jnp.mean(log_p)


if __name__ == "__main__":
    key = jax.random.PRNGKey(0)
    k1, k2, k3, k4 = jax.random.split(key, 4)

    N, D = 8, 32          # batch size per view, feature dim
    num_classes = 3

    batch_label = jax.random.randint(k1, (N,), 0, num_classes, dtype=jnp.int32)
    x1 = jax.random.normal(k2, (N, D), dtype=jnp.float32)
    x2 = jax.random.normal(k3, (N, D), dtype=jnp.float32)
    mixup = jax.random.normal(k4, (N, D), dtype=jnp.float32)

    # Two views + mixup (L = 24): identity-masked branch.
    ref = jax.block_until_ready(_reference_loss(batch_label, x1, x2, mixup=mixup, tau=5.0))

    loss_f32 = jax.block_until_ready(
        contrastive_loss(batch_label, x1, x2, mixup=mixup, l=0.5, tau=5.0))
    assert np.allclose(np.asarray(loss_f32), np.asarray(ref), rtol=1e-2, atol=1e-3), (loss_f32, ref)

    # bf16 Gram-matmul path (recommended for v6e/v7x MXU); looser tolerance.
    loss_bf16 = jax.block_until_ready(
        contrastive_loss(batch_label, x1, x2, mixup=mixup, l=0.5, tau=5.0,
                         gram_dtype=jnp.bfloat16))
    assert np.allclose(np.asarray(loss_bf16), np.asarray(ref), rtol=5e-2, atol=5e-3), (loss_bf16, ref)

    # Single-view branch (mask_i == all-ones), L = 16.
    ref1 = jax.block_until_ready(_reference_loss(batch_label, x1, mixup=mixup, tau=5.0))
    loss1 = jax.block_until_ready(
        contrastive_loss(batch_label, x1, mixup=mixup, l=0.5, tau=5.0))
    assert np.allclose(np.asarray(loss1), np.asarray(ref1), rtol=1e-2, atol=1e-3), (loss1, ref1)

    print("KERNEL_OK")
</pallas_src>

<mosaic_0001>
module attributes {stable_mosaic.version = 11 : i64} {
  func.func @_ratio_kernel(%arg0: i32, %arg1: memref<8x32xf32, #tpu.memory_space<vmem>>, %arg2: memref<24x32xf32, #tpu.memory_space<vmem>>, %arg3: memref<8x1xi32, #tpu.memory_space<vmem>>, %arg4: memref<1x24xi32, #tpu.memory_space<vmem>>, %arg5: memref<8x1xf32, #tpu.memory_space<vmem>>) attributes {dimension_semantics = [#tpu.dimension_semantics<parallel>], iteration_bounds = array<i64: 3>, scalar_prefetch = 0 : i64, scratch_operands = 0 : i64, tpu.core_type = #tpu.core_type<tc>, window_params = [{transform_indices = @transform_0, window_bounds = array<i64: 8, 32>}, {pipeline_mode = #tpu.pipeline_mode<synchronous>, transform_indices = @transform_1, window_bounds = array<i64: 24, 32>}, {transform_indices = @transform_2, window_bounds = array<i64: 8, 1>}, {pipeline_mode = #tpu.pipeline_mode<synchronous>, transform_indices = @transform_3, window_bounds = array<i64: 1, 24>}, {transform_indices = @transform_4, window_bounds = array<i64: 8, 1>}]} {
    %c0 = arith.constant 0 : index
    %c0_0 = arith.constant 0 : index
    %0 = vector.load %arg1[%c0, %c0_0] : memref<8x32xf32, #tpu.memory_space<vmem>>, vector<8x32xf32>
    %c0_1 = arith.constant 0 : index
    %c0_2 = arith.constant 0 : index
    %1 = vector.load %arg2[%c0_1, %c0_2] : memref<24x32xf32, #tpu.memory_space<vmem>>, vector<24x32xf32>
    %cst = arith.constant dense<0.000000e+00> : vector<8x24xf32>
    %2 = tpu.matmul %0, %1, %cst {dimension_numbers = #tpu.dot_dimension_numbers<[1], [1], [0], [0], [0, 0, 1, 0], [], []>} : vector<8x32xf32>, vector<24x32xf32>, vector<8x24xf32> -> vector<8x24xf32>
    %cst_3 = arith.constant 2.000000e-01 : f32
    %3 = vector.broadcast %cst_3 : f32 to vector<8x24xf32>
    %4 = arith.mulf %2, %3 : vector<8x24xf32>
    %cst_4 = arith.constant dense<0xFF800000> : vector<8xf32>
    %5 = vector.multi_reduction <maximumf>, %4, %cst_4 [1] : vector<8x24xf32> to vector<8xf32>
    %6 = vector.shape_cast %5 : vector<8xf32> to vector<8x1xf32>
    %7 = vector.broadcast %6 : vector<8x1xf32> to vector<8x24xf32>
    %8 = arith.subf %4, %7 : vector<8x24xf32>
    %9 = math.exp %8 : vector<8x24xf32>
    %c0_5 = arith.constant 0 : index
    %c0_6 = arith.constant 0 : index
    %10 = vector.load %arg3[%c0_5, %c0_6] : memref<8x1xi32, #tpu.memory_space<vmem>>, vector<8x1xi32>
    %c0_7 = arith.constant 0 : index
    %c0_8 = arith.constant 0 : index
    %11 = vector.load %arg4[%c0_7, %c0_8] : memref<1x24xi32, #tpu.memory_space<vmem>>, vector<1x24xi32>
    %12 = vector.broadcast %10 : vector<8x1xi32> to vector<8x24xi32>
    %13 = vector.broadcast %11 : vector<1x24xi32> to vector<8x24xi32>
    %14 = arith.cmpi eq, %12, %13 : vector<8x24xi32>
    %15 = arith.extui %14 : vector<8x24xi1> to vector<8x24xi32>
    %16 = arith.sitofp %15 : vector<8x24xi32> to vector<8x24xf32>
    %cst_9 = arith.constant dense<0.000000e+00> : vector<8xf32>
    %17 = vector.multi_reduction <add>, %9, %cst_9 [1] : vector<8x24xf32> to vector<8xf32>
    %18 = vector.shape_cast %17 : vector<8xf32> to vector<8x1xf32>
    %19 = arith.mulf %9, %16 : vector<8x24xf32>
    %cst_10 = arith.constant dense<0.000000e+00> : vector<8xf32>
    %20 = vector.multi_reduction <add>, %19, %cst_10 [1] : vector<8x24xf32> to vector<8xf32>
    %21 = vector.shape_cast %20 : vector<8xf32> to vector<8x1xf32>
    %22 = arith.mulf %0, %0 : vector<8x32xf32>
    %cst_11 = arith.constant dense<0.000000e+00> : vector<8xf32>
    %23 = vector.multi_reduction <add>, %22, %cst_11 [1] : vector<8x32xf32> to vector<8xf32>
    %24 = vector.shape_cast %23 : vector<8xf32> to vector<8x1xf32>
    %cst_12 = arith.constant 2.000000e-01 : f32
    %25 = vector.broadcast %cst_12 : f32 to vector<8x1xf32>
    %26 = arith.mulf %24, %25 : vector<8x1xf32>
    %27 = arith.subf %26, %6 : vector<8x1xf32>
    %28 = math.exp %27 : vector<8x1xf32>
    %29 = arith.subf %18, %28 : vector<8x1xf32>
    %30 = arith.subf %21, %28 : vector<8x1xf32>
    %cst_13 = arith.constant 1.000000e-10 : f32
    %31 = vector.broadcast %cst_13 : f32 to vector<8x1xf32>
    %32 = arith.maximumf %29, %31 : vector<8x1xf32>
    %cst_14 = arith.constant 1.000000e-10 : f32
    %33 = vector.broadcast %cst_14 : f32 to vector<8x1xf32>
    %34 = arith.maximumf %30, %33 : vector<8x1xf32>
    %35 = math.log %32 : vector<8x1xf32>
    %36 = math.log %34 : vector<8x1xf32>
    %37 = arith.subf %35, %36 : vector<8x1xf32>
    %c0_15 = arith.constant 0 : index
    %c0_16 = arith.constant 0 : index
    %38 = vector.load %arg5[%c0_15, %c0_16] : memref<8x1xf32, #tpu.memory_space<vmem>>, vector<8x1xf32>
    tpu.vector_store %arg5[%c0_15, %c0_16], %37 {strides = array<i32>} : memref<8x1xf32, #tpu.memory_space<vmem>>, vector<8x1xf32>,
    return
  }
  func.func @transform_0(%arg0: i32) -> (i32, i32) {
    %c0_i32 = arith.constant 0 : i32
    %c0_i32_0 = arith.constant 0 : i32
    return %arg0, %c0_i32 : i32, i32
  }
  func.func @transform_1(%arg0: i32) -> (i32, i32) {
    %c0_i32 = arith.constant 0 : i32
    %c0_i32_0 = arith.constant 0 : i32
    %c0_i32_1 = arith.constant 0 : i32
    return %c0_i32, %c0_i32_0 : i32, i32
  }
  func.func @transform_2(%arg0: i32) -> (i32, i32) {
    %c0_i32 = arith.constant 0 : i32
    %c0_i32_0 = arith.constant 0 : i32
    return %arg0, %c0_i32 : i32, i32
  }
  func.func @transform_3(%arg0: i32) -> (i32, i32) {
    %c0_i32 = arith.constant 0 : i32
    %c0_i32_0 = arith.constant 0 : i32
    %c0_i32_1 = arith.constant 0 : i32
    return %c0_i32, %c0_i32_0 : i32, i32
  }
  func.func @transform_4(%arg0: i32) -> (i32, i32) {
    %c0_i32 = arith.constant 0 : i32
    %c0_i32_0 = arith.constant 0 : i32
    return %arg0, %c0_i32 : i32, i32
  }
}

</mosaic_0001>

<bundles_post_ra>
// kernel: tpu_custom_call.1
= control target key start
LH: loop header
LB: loop body
LE: loop exit
PB: predicated region body
PF: predicated region fallthrough
CT: control target
= control target key end

     0   :  { %9 = vsyncpa [#allocation3], 0  ;;  %s576_s15 = smov 0   ;;  %s651_s0 = inlined_call_operand.vmem [shape: f32[24,32], index: 0, kind: input, shape index: {}]   ;;  %s652_s1 = inlined_call_operand.hbm [shape: f32[24,32], index: 1, kind: input, shape index: {}]   ;;  %s653_s2 = inlined_call_operand.vmem [shape: s32[24,1], index: 2, kind: input, shape index: {}]   ;;  %s654_s3 = inlined_call_operand.vmem [shape: s32[1,24], index: 3, kind: input, shape index: {}]   ;;  %s655_s4 = inlined_call_operand.vmem [shape: f32[24,1], index: 4, kind: output, shape index: {}]  }
   0x1 LB: > { %s582_s16 = sadd.s32 4294967295, %s542_s15   ;;  %p437_p0 = scmp.ge.s32.totalorder %s542_s15, 1  ;;  %s542_s15 = sphi %s576_s15, %s15_s15  }
   0x2   : > { %p140_p1 = scmp.lt.s32.totalorder %s542_s15, 4  ;;  %s544_s17 = smov [#allocation2]  }
   0x3   : > { %s152_s18 = sshll.u32 %s544_s17, 4  ;;  %p656_p3 = scmp.eq.s32.totalorder %s582_s16, 0  ;;  %s153_s18 = int_to_ptr.vmem [resolvable:$true] %s152_s18 }
   0x4   : > { %p586_p2 = pnand %p437_p0, %p140_p1  ;;  %s504_s23 = scalar_lea.hbm %s652_s1, 384 }
   0x5   : > { %p505_p6 = scmp.ne.s32.totalorder %s652_s1, %s504_s23  ;;  %p511_p10 = scmp.lt.u32.totalorder %s504_s23, %s652_s1 }
   0x6   : > { %s658_s19 = scalar_select %p586_p2, 1, 0 }
   0x7   : > { %p474_p4 = pneg %p586_p2 }
   0x9   : > { %p595_p5 = pnand %p656_p3, %p474_p4 }
   0xb   : > { %p506_p7 = pneg %p595_p5 }
   0xd   : > { %p507_p8 = pnand %p506_p7, %p505_p6 }
   0xf   : > { %p508_p9 = pneg %p507_p8 }
  0x11   : > { %p513_p11 = pnand %p511_p10, %p508_p9 }
  0x13   : > { %516 = shalt.err (!%p513_p11)
}
  0x14   : > { %s517_s28 = scalar_lea.vmem %s153_s18, 384  ;;  %p525_p1 = scmp.lt.s32.totalorder %s153_s18, %s153_s18 }
  0x15   : > { %p518_p12 = scmp.ne.s32.totalorder %s153_s18, %s517_s28  ;;  %p526_p4 = scmp.lt.s32.totalorder %s517_s28, %s517_s28 }
  0x17   : > { %p520_p13 = pnand %p518_p12, %p506_p7  ;;  %p527_p3 = por %p526_p4, %p525_p1 }
  0x19   : > { %p521_p0 = pneg %p520_p13 }
  0x1b   : > { %p528_p2 = pnand %p527_p3, %p521_p0 }
  0x1d   : > { %531 = shalt.err (!%p528_p2)
}
  0x1e   : > { %s545_s29 = smov 128   ;;  %s546_s30 = smov 8  }
  0x1f   : > { %477 = dma.hbm_to_vmem [thread:$0]  (!%p595_p5), %s652_s1, 384, %s153_s18, [#allocation3], %s545_s29, %s545_s29, %s546_s30  }
  0x20   : > { %p660_p6 = scmp.ne.s32.totalorder %s658_s19, 0 }
  0x21   : > { %p661_p8 = scmp.eq.s32.totalorder (!%p660_p6), %s582_s16, 0 }
  0x22   : > { %185 = sbr.rel (%p660_p6) target bundleno = 596 (0x254), region = 36 }
  0x29   : > { %537 = dma.done.wait (%p661_p8), [#allocation3], 384   ;;  %p662_p7 = pmov %p661_p8 }
  0x2a   : > { %v547_v0 = vmov 0.0|0.0   ;;  %vm548_vm0 = vmmov 0   ;;  %v549_v1 = vmov 0.0   ;;  %vm229_vm1 = vcmask 261120   ;;  %p213_p2 = scmp.lt.s32.totalorder %s582_s16, 2  ;;  %v226_v2 = vld [vmem:[#allocation2] sm:$0xff] }
  0x2b   : > { %539 = vsyncadd (%p662_p7), [#allocation3], 4294966912  ;;  %466 = vmatprep.subr.bf16.mxu0 %v547_v0  ;;  %463 = vmatprep.mubr.msk.f32.mxu0 %vm548_vm0, %v549_v1  ;;  %v227_v3 = vld [vmem:[#allocation2 + $0x8] sm:$0xff]  ;;  %v228_v5 = vld [vmem:[#allocation2 + $0x10] sm:$0xff]  ;;  %v550_v9 = vmov 0   ;;  %vm313_vm3 = vcmask 195584  }
  0x2c   : > { %vm468_vm2 = vmpackc.low %vm229_vm1, %vm229_vm1  ;;  %v467_v4 = vpack.c.bf16 %v227_v3, %v226_v2  ;;  %s664_s16 = smov (!%p213_p2, %s582_s16), 2  ;;  %495 = vset.pattern.permute.xlu0 %v550_v9  ;;  %v449_v18 = vld [vmem:[%s654_s3] ss:$0 sm:$0xff]  ;;  %vm356_vm5 = vcmask 7168  }
  0x2d   : > { %s625_s7 = sshll.u32 %s664_s16, 3 }
  0x2e   : > { %469 = vmatpush3.bf16.xpose.msk.msra.mxu0 %vm468_vm2, %v467_v4  ;;  %s216_s10 = scalar_lea.vmem %s651_s0, %s625_s7  ;;  %s220_s13 = scalar_lea.vmem %s653_s2, %s625_s7 }
  0x2f   : > { %461 = vmatprep.subr.mxu0 %v549_v1  ;;  %v225_v6 = vld [vmem:[%s216_s10] sm:$0xff]  ;;  %s224_s19 = scalar_lea.vmem %s655_s4, %s625_s7 }
  0x30   : > { %v339_v7 = vmul.f32 %v225_v6, %v225_v6  ;;  %v320_v14 = vld [vmem:[%s220_s13] sm:$0xff] }
  0x32   : > { %v340_v8 = vsel %vm229_vm1, %v339_v7, 0.0 }
  0x33   : > { %341 = vadd.xlane.f32.xlu1 %v340_v8 }
  0x36   : > { %462 = vmatpush3.xpose.msk.msra.mxu0 %vm229_vm1, %v228_v5 }
  0x39   : > { %464 = vmatmul.mubr.msk.f32.vlgmr.msra.gmra.mrb[0].mxu0 %vm229_vm1, %v225_v6 }
  0xc0   : > { %v342_v25 = vpop.xlane.xlu1 %341 }
  0xc1   : > { %v343_v26 = vmul.f32 0.2, %v342_v25 }
 0x10c   : > { %v308_v10 = vpop.f32.mrb[0].mxu0 }
 0x10d   : > { %v312_v11 = vmul.f32 0.2, %v308_v10  ;;  %v465_v12 = vpop.f32.mrb[1].mxu0 }
 0x10f   : > { %v314_v13 = vsel %vm313_vm3, %v312_v11, -inf }
 0x110   : > { %315 = vmax.xlane.f32.xlu0 %v314_v13 }
 0x126   : > { %323 = vperm.xlu0 %495, %v320_v14  }
 0x19d   : > { %v316_v15 = vpop.xlane.xlu0 %315 }
 0x19e   : > { %v317_v16 = vsub.f32 %v312_v11, %v316_v15  ;;  %v344_v27 = vsub.f32 %v343_v26, %v316_v15 }
 0x1a0   : > { %v318_v17 = vmul.f32 1.442695, %v317_v16  ;;  %v345_v28 = vmul.f32 1.442695, %v344_v27 }
 0x1a2   : > { %496 = vpow2.f32 %v318_v17 }
 0x1a3   : > { %498 = vpow2.f32 %v345_v28 }
 0x1a5   : > { %v324_v19 = vpop.permute.xlu0 %323 }
 0x1a6   : > { %vm329_vm4 = vcmp.eq.s32.totalorder %v324_v19, %v449_v18 }
 0x1a7   : > { %v450_v20 = vsel %vm329_vm4, 1.0, %v549_v1 }
 0x1ac   : > { %v497_v21 = vpop.eup %496 }
 0x1ad   : > { %v332_v22 = vsel %vm313_vm3, %v497_v21, 0.0  ;;  %v335_v23 = vmul.f32 %v497_v21, %v450_v20  ;;  %v499_v29 = vpop.eup %498 }
 0x1ae   : > { %333 = vadd.xlane.f32.xlu1 %v332_v22 }
 0x1af   : > { %v336_v24 = vsel %vm313_vm3, %v335_v23, 0.0 }
 0x1b2   : > { %337 = vadd.xlane.f32.xlu1 %v336_v24 }
 0x23b   : > { %v334_v30 = vpop.xlane.xlu1 %333 }
 0x23c   : > { %v347_v31 = vsub.f32 %v334_v30, %v499_v29 }
 0x23e   : > { %v349_v32 = vmax.f32 %v347_v31, 1e-10 }
 0x23f   : > { %v338_v33 = vpop.xlane.xlu1 %337 }
 0x240   : > { %v348_v34 = vsub.f32 %v338_v33, %v499_v29  ;;  %500 = vlog2.f32 %v349_v32 }
 0x242   : > { %v350_v35 = vmax.f32 %v348_v34, 1e-10 }
 0x244   : > { %502 = vlog2.f32 %v350_v35 }
 0x24a   : > { %v501_v36 = vpop.eup %500 }
 0x24b   : > { %v352_v38 = vmul.f32 0.6931472, %v501_v36 }
 0x24e   : > { %v503_v37 = vpop.eup %502 }
 0x24f   : > { %v354_v39 = vmul.f32 0.6931472, %v503_v37 }
 0x251   : > { %v355_v40 = vsub.f32 %v352_v38, %v354_v39 }
 0x253   : > { %357 = vst.msk [vmem:[%s224_s19] sm:$0xff] %vm356_vm5, %v355_v40 }
 0x254 PF: > { %s15_s15 = sadd.s32 1, %s542_s15  }
 0x255   : > { %p12_p3 = scmp.ge.s32.totalorder %s15_s15, 5  }
 0x257   :  { %14 = sbr.rel (!%p12_p3) target bundleno = 1 (0x1), region = 74 }
 0x25e   :  { %377 = vsyncpa [#allocation3], 1 }
 0x25f   :  { %379 = vsyncpa [#allocation3 + $0x1], 1 }

</bundles_post_ra>
